<compile_context>
chip_gen: v5e
topology: v5e:2x2
jax: 0.10.0
libtpu: 0.0.40
codegen_flags: <defaults>
</compile_context>

<pallas_src>
import functools

import jax
import jax.numpy as jnp
from jax.experimental import pallas as pl
from jax.experimental.pallas import tpu as pltpu


def _round_up(a, b):
    return (a + b - 1) // b * b


def _admsoftmax_kernel(x_ref, w_ref, lab_ref, out_ref,
                       xn_ref, sum_ref, wfy_ref,
                       *, s, m, eps, out_features, tn, compute_dtype,
                       need_col_mask):
    # x_ref:   (tm, K)   input row tile (resident across the class axis)
    # w_ref:   (tn, K)   weight tile for the current class block
    # lab_ref: (tm, 1)   int32 labels for the row tile
    # out_ref: (tm, 1)   per-row loss term L_i (written on the last class tile)
    # xn_ref:  (tm, K)   VMEM scratch: normalized rows (computed once per row tile)
    # sum_ref: (tm, 1)   VMEM scratch: running sum_j exp(s * wf_ij)
    # wfy_ref: (tm, 1)   VMEM scratch: running wf_i[label_i]
    j = pl.program_id(1)

    @pl.when(j == 0)
    def _init():
        x = x_ref[...].astype(jnp.float32)
        sumsq = jnp.sum(x * x, axis=1, keepdims=True)
        # x / max(||x||, eps)  ==  x * min(rsqrt(sum x^2), 1/eps)
        inv_norm = jnp.minimum(jax.lax.rsqrt(sumsq), jnp.float32(1.0 / eps))
        xn_ref[...] = (x * inv_norm).astype(compute_dtype)
        sum_ref[...] = jnp.zeros_like(sum_ref)
        wfy_ref[...] = jnp.zeros_like(wfy_ref)

    xn = xn_ref[...]
    w = w_ref[...].astype(compute_dtype)
    # (tm, K) . (tn, K) contracting on K -> (tm, tn); MXU, f32 accumulation,
    # no transpose of the weight tile.
    wf = jax.lax.dot_general(
        xn, w,
        dimension_numbers=(((1,), (1,)), ((), ())),
        preferred_element_type=jnp.float32)

    labels = lab_ref[...]                                             # (tm, 1)
    col = jax.lax.broadcasted_iota(jnp.int32, wf.shape, 1) + j * tn   # global class ids
    onehot = col == labels

    p = jnp.exp(s * wf)
    if need_col_mask:  # static: only needed when out_features was padded
        p = jnp.where(col < out_features, p, 0.0)
    sum_ref[...] += jnp.sum(p, axis=1, keepdims=True)
    wfy_ref[...] += jnp.sum(jnp.where(onehot, wf, 0.0), axis=1, keepdims=True)

    @pl.when(j == pl.num_programs(1) - 1)
    def _finalize():
        wf_y = wfy_ref[...]
        numerator = s * (wf_y - m)
        excl = sum_ref[...] - jnp.exp(s * wf_y)      # sum over j != label
        denominator = jnp.exp(numerator) + excl
        out_ref[...] = numerator - jnp.log(denominator)


def adm_softmax_loss(x, weight, labels, *, s=30.0, m=0.2, eps=1e-12,
                     block_rows=128, block_cols=512):
    """Pallas implementation of AdMSoftmaxLoss.forward(logits, labels)."""
    n, k = x.shape
    out_features, k_w = weight.shape
    assert k == k_w

    # bf16 weights feed the MXU at full rate; accumulation stays f32.
    compute_dtype = (jnp.bfloat16 if weight.dtype == jnp.dtype(jnp.bfloat16)
                     else jnp.float32)

    # Tile sizes: sublane-aligned row tiles, lane-dense class tiles.
    tm = min(block_rows, _round_up(n, 8))
    tn = min(block_cols, _round_up(out_features, 128))
    n_pad = _round_up(n, tm)
    o_pad = _round_up(out_features, tn)

    x_p = x if n_pad == n else jnp.pad(x, ((0, n_pad - n), (0, 0)))
    w_p = (weight if o_pad == out_features
           else jnp.pad(weight, ((0, o_pad - out_features), (0, 0))))
    lab = labels.astype(jnp.int32).reshape(n, 1)
    lab_p = lab if n_pad == n else jnp.pad(lab, ((0, n_pad - n), (0, 0)))

    grid = (n_pad // tm, o_pad // tn)

    kernel = functools.partial(
        _admsoftmax_kernel, s=float(s), m=float(m), eps=float(eps),
        out_features=out_features, tn=tn, compute_dtype=compute_dtype,
        need_col_mask=(o_pad != out_features))

    itemsize_x = x_p.dtype.itemsize
    itemsize_w = w_p.dtype.itemsize
    cost = pl.CostEstimate(
        flops=2 * n_pad * k * o_pad + 6 * n_pad * o_pad,
        transcendentals=n_pad * o_pad + 3 * n_pad,
        bytes_accessed=(n_pad * k * itemsize_x
                        + o_pad * k * itemsize_w * grid[0]   # W streamed per row tile
                        + n_pad * 4 + n_pad * 4))

    per_row = pl.pallas_call(
        kernel,
        out_shape=jax.ShapeDtypeStruct((n_pad, 1), jnp.float32),
        grid_spec=pltpu.PrefetchScalarGridSpec(
            num_scalar_prefetch=0,
            grid=grid,
            in_specs=[
                pl.BlockSpec((tm, k), lambda i, j: (i, 0)),   # x row tile
                pl.BlockSpec((tn, k), lambda i, j: (j, 0)),   # W class tile
                pl.BlockSpec((tm, 1), lambda i, j: (i, 0)),   # labels
            ],
            out_specs=pl.BlockSpec((tm, 1), lambda i, j: (i, 0)),
            scratch_shapes=[
                pltpu.VMEM((tm, k), compute_dtype),   # cached normalized rows
                pltpu.VMEM((tm, 1), jnp.float32),     # running exp-sum
                pltpu.VMEM((tm, 1), jnp.float32),     # running label logit
            ]),
        compiler_params=pltpu.CompilerParams(
            dimension_semantics=("parallel", "arbitrary"),
            vmem_limit_bytes=48 * 1024 * 1024),
        cost_estimate=cost,
    )(x_p, w_p, lab_p)

    return -jnp.mean(per_row[:n, 0])


def _reference(x, weight, labels, *, s=30.0, m=0.2, eps=1e-12):
    """Pure-JAX reference mirroring the PyTorch forward exactly."""
    xn = x / jnp.maximum(jnp.linalg.norm(x, axis=1, keepdims=True), eps)
    wf = xn @ weight.T
    n = x.shape[0]
    wf_y = wf[jnp.arange(n), labels]
    numerator = s * (wf_y - m)
    onehot = jax.nn.one_hot(labels, weight.shape[0], dtype=bool)
    excl_sum = jnp.sum(jnp.where(onehot, 0.0, jnp.exp(s * wf)), axis=1)
    denominator = jnp.exp(numerator) + excl_sum
    L = numerator - jnp.log(denominator)
    return -jnp.mean(L)


if __name__ == "__main__":
    key = jax.random.PRNGKey(0)

    # --- Test 1: small shapes with row + class padding (single tile each) ---
    N, IN_FEATURES, OUT_FEATURES = 12, 32, 40
    S, M = 30.0, 0.2
    kx, kw, kl = jax.random.split(key, 3)
    x = jax.random.normal(kx, (N, IN_FEATURES), dtype=jnp.float32)
    bound = 1.0 / (IN_FEATURES ** 0.5)
    weight = jax.random.uniform(kw, (OUT_FEATURES, IN_FEATURES),
                                dtype=jnp.float32, minval=-bound, maxval=bound)
    labels = jax.random.randint(kl, (N,), 0, OUT_FEATURES, dtype=jnp.int32)

    loss = adm_softmax_loss(x, weight, labels, s=S, m=M)
    loss = jax.block_until_ready(loss)
    ref = _reference(x, weight, labels, s=S, m=M)
    assert jnp.isfinite(loss), loss
    assert jnp.allclose(loss, ref, rtol=1e-4, atol=1e-5), (loss, ref)

    # --- Test 2: force multiple row tiles and class tiles (accumulation path) ---
    N2, K2, O2 = 24, 32, 300
    kx2, kw2, kl2 = jax.random.split(jax.random.PRNGKey(1), 3)
    x2 = jax.random.normal(kx2, (N2, K2), dtype=jnp.float32)
    bound2 = 1.0 / (K2 ** 0.5)
    w2 = jax.random.uniform(kw2, (O2, K2), dtype=jnp.float32,
                            minval=-bound2, maxval=bound2)
    l2 = jax.random.randint(kl2, (N2,), 0, O2, dtype=jnp.int32)

    loss2 = adm_softmax_loss(x2, w2, l2, s=S, m=M, block_rows=8, block_cols=128)
    loss2 = jax.block_until_ready(loss2)
    ref2 = _reference(x2, w2, l2, s=S, m=M)
    assert jnp.isfinite(loss2), loss2
    assert jnp.allclose(loss2, ref2, rtol=1e-4, atol=1e-5), (loss2, ref2)

    print("KERNEL_OK")
</pallas_src>

<mosaic_0001>
module attributes {stable_mosaic.version = 11 : i64} {
  func.func @_admsoftmax_kernel(%arg0: i32, %arg1: i32, %arg2: memref<16x32xf32, #tpu.memory_space<vmem>>, %arg3: memref<128x32xf32, #tpu.memory_space<vmem>>, %arg4: memref<16x1xi32, #tpu.memory_space<vmem>>, %arg5: memref<16x1xf32, #tpu.memory_space<vmem>>, %arg6: memref<16x32xf32, #tpu.memory_space<vmem>>, %arg7: memref<16x1xf32, #tpu.memory_space<vmem>>, %arg8: memref<16x1xf32, #tpu.memory_space<vmem>>) attributes {dimension_semantics = [#tpu.dimension_semantics<parallel>, #tpu.dimension_semantics<arbitrary>], iteration_bounds = array<i64: 1, 1>, scalar_prefetch = 0 : i64, scratch_operands = 3 : i64, tpu.core_type = #tpu.core_type<tc>, window_params = [{transform_indices = @transform_0, window_bounds = array<i64: 16, 32>}, {transform_indices = @transform_1, window_bounds = array<i64: 128, 32>}, {transform_indices = @transform_2, window_bounds = array<i64: 16, 1>}, {transform_indices = @transform_3, window_bounds = array<i64: 16, 1>}]} {
    %c0_i32 = arith.constant 0 : i32
    %0 = arith.cmpi eq, %arg1, %c0_i32 : i32
    %1 = arith.extui %0 : i1 to i32
    %c0_i32_0 = arith.constant 0 : i32
    %2 = arith.cmpi ne, %1, %c0_i32_0 : i32
    scf.if %2 {
      %c0_21 = arith.constant 0 : index
      %c0_22 = arith.constant 0 : index
      %35 = vector.load %arg2[%c0_21, %c0_22] : memref<16x32xf32, #tpu.memory_space<vmem>>, vector<16x32xf32>
      %36 = arith.mulf %35, %35 : vector<16x32xf32>
      %cst_23 = arith.constant dense<0.000000e+00> : vector<16xf32>
      %37 = vector.multi_reduction <add>, %36, %cst_23 [1] : vector<16x32xf32> to vector<16xf32>
      %38 = vector.shape_cast %37 : vector<16xf32> to vector<16x1xf32>
      %39 = math.rsqrt %38 : vector<16x1xf32>
      %cst_24 = arith.constant 9.99999995E+11 : f32
      %40 = vector.broadcast %cst_24 : f32 to vector<16x1xf32>
      %41 = arith.minimumf %39, %40 : vector<16x1xf32>
      %42 = vector.broadcast %41 : vector<16x1xf32> to vector<16x32xf32>
      %43 = arith.mulf %35, %42 : vector<16x32xf32>
      %c0_25 = arith.constant 0 : index
      %c0_26 = arith.constant 0 : index
      %44 = vector.load %arg6[%c0_25, %c0_26] : memref<16x32xf32, #tpu.memory_space<vmem>>, vector<16x32xf32>
      tpu.vector_store %arg6[%c0_25, %c0_26], %43 {strides = array<i32>} : memref<16x32xf32, #tpu.memory_space<vmem>>, vector<16x32xf32>,
      %cst_27 = arith.constant 0.000000e+00 : f32
      %45 = vector.broadcast %cst_27 : f32 to vector<16x1xf32>
      %c0_28 = arith.constant 0 : index
      %c0_29 = arith.constant 0 : index
      %46 = vector.load %arg7[%c0_28, %c0_29] : memref<16x1xf32, #tpu.memory_space<vmem>>, vector<16x1xf32>
      tpu.vector_store %arg7[%c0_28, %c0_29], %45 {strides = array<i32>} : memref<16x1xf32, #tpu.memory_space<vmem>>, vector<16x1xf32>,
      %cst_30 = arith.constant 0.000000e+00 : f32
      %47 = vector.broadcast %cst_30 : f32 to vector<16x1xf32>
      %c0_31 = arith.constant 0 : index
      %c0_32 = arith.constant 0 : index
      %48 = vector.load %arg8[%c0_31, %c0_32] : memref<16x1xf32, #tpu.memory_space<vmem>>, vector<16x1xf32>
      tpu.vector_store %arg8[%c0_31, %c0_32], %47 {strides = array<i32>} : memref<16x1xf32, #tpu.memory_space<vmem>>, vector<16x1xf32>,
    } else {
    }
    %c0 = arith.constant 0 : index
    %c0_1 = arith.constant 0 : index
    %3 = vector.load %arg6[%c0, %c0_1] : memref<16x32xf32, #tpu.memory_space<vmem>>, vector<16x32xf32>
    %c0_2 = arith.constant 0 : index
    %c0_3 = arith.constant 0 : index
    %4 = vector.load %arg3[%c0_2, %c0_3] : memref<128x32xf32, #tpu.memory_space<vmem>>, vector<128x32xf32>
    %cst = arith.constant dense<0.000000e+00> : vector<16x128xf32>
    %5 = tpu.matmul %3, %4, %cst {dimension_numbers = #tpu.dot_dimension_numbers<[1], [1], [0], [0], [0, 0, 1, 0], [], []>} : vector<16x32xf32>, vector<128x32xf32>, vector<16x128xf32> -> vector<16x128xf32>
    %c0_4 = arith.constant 0 : index
    %c0_5 = arith.constant 0 : index
    %6 = vector.load %arg4[%c0_4, %c0_5] : memref<16x1xi32, #tpu.memory_space<vmem>>, vector<16x1xi32>
    %7 = tpu.iota {dimensions = array<i32: 1>} : vector<16x128xi32>
    %c128_i32 = arith.constant 128 : i32
    %8 = arith.muli %arg1, %c128_i32 : i32
    %9 = vector.broadcast %8 : i32 to vector<16x128xi32>
    %10 = arith.addi %7, %9 : vector<16x128xi32>
    %11 = vector.broadcast %6 : vector<16x1xi32> to vector<16x128xi32>
    %12 = arith.cmpi eq, %10, %11 : vector<16x128xi32>
    %cst_6 = arith.constant 3.000000e+01 : f32
    %13 = vector.broadcast %cst_6 : f32 to vector<16x128xf32>
    %14 = arith.mulf %13, %5 : vector<16x128xf32>
    %15 = math.exp %14 : vector<16x128xf32>
    %c40_i32 = arith.constant 40 : i32
    %16 = vector.broadcast %c40_i32 : i32 to vector<16x128xi32>
    %17 = arith.cmpi slt, %10, %16 : vector<16x128xi32>
    %cst_7 = arith.constant 0.000000e+00 : f32
    %18 = vector.broadcast %cst_7 : f32 to vector<16x128xf32>
    %19 = arith.select %17, %15, %18 : vector<16x128xi1>, vector<16x128xf32>
    %c0_8 = arith.constant 0 : index
    %c0_9 = arith.constant 0 : index
    %20 = vector.load %arg7[%c0_8, %c0_9] : memref<16x1xf32, #tpu.memory_space<vmem>>, vector<16x1xf32>
    %cst_10 = arith.constant dense<0.000000e+00> : vector<16xf32>
    %21 = vector.multi_reduction <add>, %19, %cst_10 [1] : vector<16x128xf32> to vector<16xf32>
    %22 = vector.shape_cast %21 : vector<16xf32> to vector<16x1xf32>
    %23 = arith.addf %20, %22 : vector<16x1xf32>
    %c0_11 = arith.constant 0 : index
    %c0_12 = arith.constant 0 : index
    %24 = vector.load %arg7[%c0_11, %c0_12] : memref<16x1xf32, #tpu.memory_space<vmem>>, vector<16x1xf32>
    tpu.vector_store %arg7[%c0_11, %c0_12], %23 {strides = array<i32>} : memref<16x1xf32, #tpu.memory_space<vmem>>, vector<16x1xf32>,
    %c0_13 = arith.constant 0 : index
    %c0_14 = arith.constant 0 : index
    %25 = vector.load %arg8[%c0_13, %c0_14] : memref<16x1xf32, #tpu.memory_space<vmem>>, vector<16x1xf32>
    %cst_15 = arith.constant 0.000000e+00 : f32
    %26 = vector.broadcast %cst_15 : f32 to vector<16x128xf32>
    %27 = arith.select %12, %5, %26 : vector<16x128xi1>, vector<16x128xf32>
    %cst_16 = arith.constant dense<0.000000e+00> : vector<16xf32>
    %28 = vector.multi_reduction <add>, %27, %cst_16 [1] : vector<16x128xf32> to vector<16xf32>
    %29 = vector.shape_cast %28 : vector<16xf32> to vector<16x1xf32>
    %30 = arith.addf %25, %29 : vector<16x1xf32>
    %c0_17 = arith.constant 0 : index
    %c0_18 = arith.constant 0 : index
    %31 = vector.load %arg8[%c0_17, %c0_18] : memref<16x1xf32, #tpu.memory_space<vmem>>, vector<16x1xf32>
    tpu.vector_store %arg8[%c0_17, %c0_18], %30 {strides = array<i32>} : memref<16x1xf32, #tpu.memory_space<vmem>>, vector<16x1xf32>,
    %c0_i32_19 = arith.constant 0 : i32
    %32 = arith.cmpi eq, %arg1, %c0_i32_19 : i32
    %33 = arith.extui %32 : i1 to i32
    %c0_i32_20 = arith.constant 0 : i32
    %34 = arith.cmpi ne, %33, %c0_i32_20 : i32
    scf.if %34 {
      %c0_21 = arith.constant 0 : index
      %c0_22 = arith.constant 0 : index
      %35 = vector.load %arg8[%c0_21, %c0_22] : memref<16x1xf32, #tpu.memory_space<vmem>>, vector<16x1xf32>
      %cst_23 = arith.constant 2.000000e-01 : f32
      %36 = vector.broadcast %cst_23 : f32 to vector<16x1xf32>
      %37 = arith.subf %35, %36 : vector<16x1xf32>
      %cst_24 = arith.constant 3.000000e+01 : f32
      %38 = vector.broadcast %cst_24 : f32 to vector<16x1xf32>
      %39 = arith.mulf %38, %37 : vector<16x1xf32>
      %c0_25 = arith.constant 0 : index
      %c0_26 = arith.constant 0 : index
      %40 = vector.load %arg7[%c0_25, %c0_26] : memref<16x1xf32, #tpu.memory_space<vmem>>, vector<16x1xf32>
      %cst_27 = arith.constant 3.000000e+01 : f32
      %41 = vector.broadcast %cst_27 : f32 to vector<16x1xf32>
      %42 = arith.mulf %41, %35 : vector<16x1xf32>
      %43 = math.exp %42 : vector<16x1xf32>
      %44 = arith.subf %40, %43 : vector<16x1xf32>
      %45 = math.exp %39 : vector<16x1xf32>
      %46 = arith.addf %45, %44 : vector<16x1xf32>
      %47 = math.log %46 : vector<16x1xf32>
      %48 = arith.subf %39, %47 : vector<16x1xf32>
      %c0_28 = arith.constant 0 : index
      %c0_29 = arith.constant 0 : index
      %49 = vector.load %arg5[%c0_28, %c0_29] : memref<16x1xf32, #tpu.memory_space<vmem>>, vector<16x1xf32>
      tpu.vector_store %arg5[%c0_28, %c0_29], %48 {strides = array<i32>} : memref<16x1xf32, #tpu.memory_space<vmem>>, vector<16x1xf32>,
    } else {
    }
    return
  }
  func.func @transform_0(%arg0: i32, %arg1: i32) -> (i32, i32) {
    %c0_i32 = arith.constant 0 : i32
    %c0_i32_0 = arith.constant 0 : i32
    return %arg0, %c0_i32 : i32, i32
  }
  func.func @transform_1(%arg0: i32, %arg1: i32) -> (i32, i32) {
    %c0_i32 = arith.constant 0 : i32
    %c0_i32_0 = arith.constant 0 : i32
    return %arg1, %c0_i32 : i32, i32
  }
  func.func @transform_2(%arg0: i32, %arg1: i32) -> (i32, i32) {
    %c0_i32 = arith.constant 0 : i32
    %c0_i32_0 = arith.constant 0 : i32
    return %arg0, %c0_i32 : i32, i32
  }
  func.func @transform_3(%arg0: i32, %arg1: i32) -> (i32, i32) {
    %c0_i32 = arith.constant 0 : i32
    %c0_i32_0 = arith.constant 0 : i32
    return %arg0, %c0_i32 : i32, i32
  }
}

</mosaic_0001>

<bundles_post_ra>
// kernel: tpu_custom_call.1
= control target key start
LH: loop header
LB: loop body
LE: loop exit
PB: predicated region body
PF: predicated region fallthrough
CT: control target
= control target key end

     0   :  { %vm22_vm0 = vcmask 261120   ;;  %v300_v24 = vmov 0   ;;  %vm55_vm7 = vcmask 7168   ;;  %v158_v47 = vlaneseq  ;;  %s446_s0 = inlined_call_operand.vmem [shape: f32[16,32], index: 0, kind: input, shape index: {}]   ;;  %s447_s1 = inlined_call_operand.vmem [shape: f32[128,32], index: 1, kind: input, shape index: {}]   ;;  %s448_s2 = inlined_call_operand.vmem [shape: s32[16,1], index: 2, kind: input, shape index: {}]   ;;  %s449_s3 = inlined_call_operand.vmem [shape: f32[16,1], index: 3, kind: output, shape index: {}]  }
   0x1   :  { %v325_v0 = vld [vmem:[%s446_s0] sm:$0xff]  ;;  %v77_v1 = vld [vmem:[%s447_s1 + $0x78] sm:$0xff]  ;;  %v337_v3 = vld [vmem:[%s446_s0 + $0x8] sm:$0xff]  ;;  %278 = vset.pattern.permute.xlu1 %v300_v24  ;;  %279 = vset.pattern.permute.xlu0 %v300_v24  ;;  %v301_v48 = vmov 0.0  }
   0x2   :  { %v20_v2 = vmul.f32 %v325_v0, %v325_v0  ;;  %240 = vmatpush.xpose.msk.msra.mxu0 %vm22_vm0, %v77_v1  ;;  %260 = vmatpush.xpose.msk.msra.mxu1 %vm22_vm0, %v77_v1  ;;  %v76_v4 = vld [vmem:[%s447_s1 + $0x70] sm:$0xff]  ;;  %v21_v6 = vmul.f32 %v337_v3, %v337_v3  ;;  %v75_v7 = vld [vmem:[%s447_s1 + $0x68] sm:$0xff]  ;;  %v74_v9 = vld [vmem:[%s447_s1 + $0x60] sm:$0xff]  ;;  %58 = vst.msk [vmem:[#allocation4] sm:$0xff] %vm55_vm7, %v301_v48  ;;  %v159_v49 = vand.u32 127, %v158_v47 }
   0x3   :  { %v73_v10 = vld [vmem:[%s447_s1 + $0x58] sm:$0xff]  ;;  %v72_v11 = vld [vmem:[%s447_s1 + $0x50] sm:$0xff]  ;;  %v71_v12 = vld [vmem:[%s447_s1 + $0x48] sm:$0xff]  ;;  %56 = vst.msk [vmem:[#allocation3] sm:$0xff] %vm55_vm7, %v301_v48 }
   0x4   :  { %v23_v5 = vsel %vm22_vm0, %v20_v2, 0.0  ;;  %v26_v8 = vsel %vm22_vm0, %v21_v6, 0.0  ;;  %v70_v13 = vld [vmem:[%s447_s1 + $0x40] sm:$0xff]  ;;  %v69_v14 = vld [vmem:[%s447_s1 + $0x38] sm:$0xff]  ;;  %v68_v15 = vld [vmem:[%s447_s1 + $0x30] sm:$0xff]  ;;  %57 = vst.msk [vmem:[#allocation3 + $0x8] sm:$0xff] %vm55_vm7, %v301_v48 }
   0x5   :  { %24 = vadd.xlane.f32.xlu0 %v23_v5  ;;  %v67_v16 = vld [vmem:[%s447_s1 + $0x28] sm:$0xff]  ;;  %v66_v17 = vld [vmem:[%s447_s1 + $0x20] sm:$0xff]  ;;  %v65_v18 = vld [vmem:[%s447_s1 + $0x18] sm:$0xff]  ;;  %59 = vst.msk [vmem:[#allocation4 + $0x8] sm:$0xff] %vm55_vm7, %v301_v48  ;;  %vm177_vm10 = vcmp.lt.s32.totalorder %v159_v49, 40 }
   0x6   :  { %241 = vmatpush.xpose.msk.msra.mxu0 %vm22_vm0, %v76_v4  ;;  %261 = vmatpush.xpose.msk.msra.mxu1 %vm22_vm0, %v76_v4  ;;  %v64_v19 = vld [vmem:[%s447_s1 + $0x10] sm:$0xff]  ;;  %v63_v20 = vld [vmem:[%s447_s1 + $0x8] sm:$0xff]  ;;  %v62_v21 = vld [vmem:[%s447_s1] sm:$0xff] }
   0x7   :  { %v156_v22 = vld [vmem:[%s448_s2] sm:$0xff]  ;;  %v157_v26 = vld [vmem:[%s448_s2 + $0x8] sm:$0xff] }
   0x8   :  { %164 = vperm.xlu1 %278, %v156_v22  }
   0xa   :  { %242 = vmatpush.xpose.msk.msra.mxu0 %vm22_vm0, %v75_v7  ;;  %262 = vmatpush.xpose.msk.msra.mxu1 %vm22_vm0, %v75_v7  ;;  %v180_v6 = vld [vmem:[#allocation3] sm:$0xff] }
   0xd   :  { %27 = vadd.xlane.f32.xlu0 %v26_v8 }
   0xe   :  { %243 = vmatpush.xpose.msk.msra.mxu0 %vm22_vm0, %v74_v9  ;;  %263 = vmatpush.xpose.msk.msra.mxu1 %vm22_vm0, %v74_v9 }
  0x10   :  { %167 = vperm.xlu1 %278, %v157_v26  }
  0x12   :  { %244 = vmatpush.xpose.msk.msra.mxu0 %vm22_vm0, %v73_v10  ;;  %264 = vmatpush.xpose.msk.msra.mxu1 %vm22_vm0, %v73_v10 }
  0x16   :  { %245 = vmatpush.xpose.msk.msra.mxu0 %vm22_vm0, %v72_v11  ;;  %265 = vmatpush.xpose.msk.msra.mxu1 %vm22_vm0, %v72_v11 }
  0x1a   :  { %246 = vmatpush.xpose.msk.msra.mxu0 %vm22_vm0, %v71_v12  ;;  %266 = vmatpush.xpose.msk.msra.mxu1 %vm22_vm0, %v71_v12 }
  0x1e   :  { %247 = vmatpush.xpose.msk.msra.mxu0 %vm22_vm0, %v70_v13  ;;  %267 = vmatpush.xpose.msk.msra.mxu1 %vm22_vm0, %v70_v13 }
  0x22   :  { %248 = vmatpush.xpose.msk.msra.mxu0 %vm22_vm0, %v69_v14  ;;  %268 = vmatpush.xpose.msk.msra.mxu1 %vm22_vm0, %v69_v14 }
  0x26   :  { %249 = vmatpush.xpose.msk.msra.mxu0 %vm22_vm0, %v68_v15  ;;  %269 = vmatpush.xpose.msk.msra.mxu1 %vm22_vm0, %v68_v15  ;;  %v181_v15 = vld [vmem:[#allocation3 + $0x8] sm:$0xff] }
  0x2a   :  { %250 = vmatpush.xpose.msk.msra.mxu0 %vm22_vm0, %v67_v16  ;;  %270 = vmatpush.xpose.msk.msra.mxu1 %vm22_vm0, %v67_v16 }
  0x2e   :  { %251 = vmatpush.xpose.msk.msra.mxu0 %vm22_vm0, %v66_v17  ;;  %271 = vmatpush.xpose.msk.msra.mxu1 %vm22_vm0, %v66_v17 }
  0x32   :  { %252 = vmatpush.xpose.msk.msra.mxu0 %vm22_vm0, %v65_v18  ;;  %272 = vmatpush.xpose.msk.msra.mxu1 %vm22_vm0, %v65_v18 }
  0x36   :  { %253 = vmatpush.xpose.msk.msra.mxu0 %vm22_vm0, %v64_v19  ;;  %273 = vmatpush.xpose.msk.msra.mxu1 %vm22_vm0, %v64_v19 }
  0x3a   :  { %254 = vmatpush.xpose.msk.msra.mxu0 %vm22_vm0, %v63_v20  ;;  %274 = vmatpush.xpose.msk.msra.mxu1 %vm22_vm0, %v63_v20 }
  0x3e   :  { %255 = vmatpush.xpose.msk.msra.mxu0 %vm22_vm0, %v62_v21  ;;  %275 = vmatpush.xpose.msk.msra.mxu1 %vm22_vm0, %v62_v21 }
  0x78   :  { %v25_v23 = vpop.xlane.xlu0 %24 }
  0x79   :  { %280 = vrsqrt.f32 %v25_v23  ;;  %vm35_vm2 = vweird.f32 %v25_v23 }
  0x7a   :  { %v165_v50 = vpop.permute.xlu1 %164 }
  0x7b   :  { %vm169_vm8 = vcmp.eq.s32.totalorder %v159_v49, %v165_v50 }
  0x7f   :  { %v281_v25 = vpop.eup %280 }
  0x80   :  { %v30_v27 = vmul.f32 %v281_v25, %v25_v23  ;;  %v28_v28 = vpop.xlane.xlu0 %27  ;;  %vm36_vm1 = vweird.f32 %v281_v25 }
  0x81   :  { %282 = vrsqrt.f32 %v28_v28  ;;  %vm37_vm3 = vmor %vm35_vm2, %vm36_vm1  ;;  %vm45_vm5 = vweird.f32 %v28_v28 }
  0x82   :  { %v31_v29 = vmul.f32 %v281_v25, %v30_v27  ;;  %v168_v55 = vpop.permute.xlu1 %167 }
  0x83   :  { %vm170_vm9 = vcmp.eq.s32.totalorder %v159_v49, %v168_v55 }
  0x84   :  { %v32_v30 = vmul.f32 0.5, %v31_v29 }
  0x86   :  { %v33_v31 = vsub.f32 1.5, %v32_v30 }
  0x87   :  { %v283_v32 = vpop.eup %282 }
  0x88   :  { %v34_v33 = vmul.f32 %v281_v25, %v33_v31  ;;  %v40_v34 = vmul.f32 %v283_v32, %v28_v28  ;;  %vm46_vm4 = vweird.f32 %v283_v32 }
  0x89   :  { %vm47_vm6 = vmor %vm45_vm5, %vm46_vm4 }
  0x8a   :  { %v38_v35 = vsel %vm37_vm3, %v281_v25, %v34_v33  ;;  %v41_v36 = vmul.f32 %v283_v32, %v40_v34 }
  0x8b   :  { %v49_v37 = vmin.f32 %v38_v35, 1e+12 }
  0x8c   :  { %v42_v38 = vmul.f32 0.5, %v41_v36 }
  0x8d   :  { %v51_v39 = vmul.f32 %v49_v37, %v325_v0  ;;  %v191_v0 = vld [vmem:[#allocation4] sm:$0xff] }
  0x8e   :  { %v43_v40 = vsub.f32 1.5, %v42_v38 }
  0x8f   :  { %53 = vst.msk [vmem:[#allocation2] sm:$0xff] %vm22_vm0, %v51_v39 }
  0x90   :  { %v44_v41 = vmul.f32 %v283_v32, %v43_v40 }
  0x92   :  { %v48_v42 = vsel %vm47_vm6, %v283_v32, %v44_v41 }
  0x93   :  { %v50_v43 = vmin.f32 %v48_v42, 1e+12 }
  0x95   :  { %v52_v44 = vmul.f32 %v50_v43, %v337_v3  ;;  %v192_v3 = vld [vmem:[#allocation4 + $0x8] sm:$0xff] }
  0x96   :  { %v60_v45 = vld [vmem:[#allocation2] sm:$0xff] }
  0x97   :  { %54 = vst.msk [vmem:[#allocation2 + $0x8] sm:$0xff] %vm22_vm0, %v52_v44  ;;  %256 = vmatmul.msk.f32.vlgmr.msra.gmra.mxu0 %vm22_vm0, %v60_v45 }
  0x9e   :  { %v61_v46 = vld [vmem:[#allocation2 + $0x8] sm:$0xff] }
  0x9f   :  { %257 = vmatmul.msk.f32.vlgmr.msra.gmra.mxu1 %vm22_vm0, %v61_v46 }
 0x114   :  { %v150_v51 = vpop.f32.mrf.mxu0 }
 0x115   :  { %v171_v52 = vmul.f32 30.0, %v150_v51  ;;  %v193_v53 = vsel %vm169_vm8, %v150_v51, 0.0 }
 0x116   :  { %195 = vadd.xlane.f32.xlu2 %v193_v53 }
 0x117   :  { %v173_v54 = vmul.f32 1.442695, %v171_v52 }
 0x119   :  { %284 = vpow2.f32 %v173_v54 }
 0x11c   :  { %v153_v56 = vpop.f32.mrf.mxu1 }
 0x11d   :  { %v172_v57 = vmul.f32 30.0, %v153_v56  ;;  %v194_v58 = vsel %vm170_vm9, %v153_v56, 0.0 }
 0x11e   :  { %197 = vadd.xlane.f32.xlu2 %v194_v58 }
 0x11f   :  { %v285_v59 = vpop.eup %284  ;;  %v175_v60 = vmul.f32 1.442695, %v172_v57 }
 0x120   :  { %v178_v61 = vsel %vm177_vm10, %v285_v59, 0.0 }
 0x121   :  { %286 = vpow2.f32 %v175_v60  ;;  %182 = vadd.xlane.f32.xlu0 %v178_v61 }
 0x127   :  { %v287_v62 = vpop.eup %286 }
 0x128   :  { %v179_v63 = vsel %vm177_vm10, %v287_v62, 0.0 }
 0x129   :  { %184 = vadd.xlane.f32.xlu1 %v179_v63 }
 0x189   :  { %v196_v1 = vpop.xlane.xlu2 %195 }
 0x18a   :  { %v199_v2 = vadd.f32 %v196_v1, %v191_v0 }
 0x18c   :  { %201 = vst.msk [vmem:[#allocation4] sm:$0xff] %vm55_vm7, %v199_v2 }
 0x191   :  { %v198_v4 = vpop.xlane.xlu2 %197 }
 0x192   :  { %v200_v5 = vadd.f32 %v198_v4, %v192_v3 }
 0x193   :  { %v206_v7 = vld [vmem:[#allocation4] sm:$0xff] }
 0x194   :  { %v258_v8 = vadd.f32 -0.2, %v206_v7  ;;  %v214_v9 = vmul.f32 30.0, %v206_v7  ;;  %202 = vst.msk [vmem:[#allocation4 + $0x8] sm:$0xff] %vm55_vm7, %v200_v5  ;;  %v183_v10 = vpop.xlane.xlu0 %182 }
 0x195   :  { %v186_v11 = vadd.f32 %v183_v10, %v180_v6 }
 0x196   :  { %v210_v12 = vmul.f32 30.0, %v258_v8  ;;  %v216_v13 = vmul.f32 1.442695, %v214_v9 }
 0x197   :  { %189 = vst.msk [vmem:[#allocation3] sm:$0xff] %vm55_vm7, %v186_v11 }
 0x198   :  { %288 = vpow2.f32 %v216_v13  ;;  %v222_v14 = vmul.f32 1.442695, %v210_v12 }
 0x19a   :  { %290 = vpow2.f32 %v222_v14 }
 0x19b   :  { %v207_v16 = vld [vmem:[#allocation4 + $0x8] sm:$0xff] }
 0x19c   :  { %v259_v17 = vadd.f32 -0.2, %v207_v16  ;;  %v215_v18 = vmul.f32 30.0, %v207_v16  ;;  %v185_v19 = vpop.xlane.xlu1 %184 }
 0x19d   :  { %v187_v20 = vadd.f32 %v185_v19, %v181_v15 }
 0x19e   :  { %v289_v21 = vpop.eup %288  ;;  %v211_v22 = vmul.f32 30.0, %v259_v17  ;;  %v218_v23 = vmul.f32 1.442695, %v215_v18  ;;  %v212_v24 = vld [vmem:[#allocation3] sm:$0xff] }
 0x19f   :  { %v220_v25 = vsub.f32 %v212_v24, %v289_v21  ;;  %190 = vst.msk [vmem:[#allocation3 + $0x8] sm:$0xff] %vm55_vm7, %v187_v20 }
 0x1a0   :  { %v291_v26 = vpop.eup %290  ;;  %292 = vpow2.f32 %v218_v23  ;;  %v224_v27 = vmul.f32 1.442695, %v211_v22 }
 0x1a1   :  { %v226_v28 = vadd.f32 %v291_v26, %v220_v25 }
 0x1a2   :  { %294 = vpow2.f32 %v224_v27 }
 0x1a3   :  { %296 = vlog2.f32 %v226_v28 }
 0x1a6   :  { %v293_v29 = vpop.eup %292  ;;  %v213_v30 = vld [vmem:[#allocation3 + $0x8] sm:$0xff] }
 0x1a7   :  { %v221_v31 = vsub.f32 %v213_v30, %v293_v29 }
 0x1a8   :  { %v295_v32 = vpop.eup %294 }
 0x1a9   :  { %v297_v33 = vpop.eup %296  ;;  %v227_v34 = vadd.f32 %v295_v32, %v221_v31 }
 0x1aa   :  { %v229_v35 = vmul.f32 0.6931472, %v297_v33 }
 0x1ab   :  { %298 = vlog2.f32 %v227_v34 }
 0x1ac   :  { %v232_v36 = vsub.f32 %v210_v12, %v229_v35 }
 0x1ae   :  { %234 = vst.msk [vmem:[%s449_s3] sm:$0xff] %vm55_vm7, %v232_v36 }
 0x1b1   :  { %v299_v37 = vpop.eup %298 }
 0x1b2   :  { %v231_v38 = vmul.f32 0.6931472, %v299_v37 }
 0x1b4   :  { %v233_v39 = vsub.f32 %v211_v22, %v231_v38 }
 0x1b6   :  { %235 = vst.msk [vmem:[%s449_s3 + $0x8] sm:$0xff] %vm55_vm7, %v233_v39 }

</bundles_post_ra>
